<compile_context>
chip_gen: v5e
topology: v5e:2x2
jax: 0.10.0
libtpu: 0.0.40
codegen_flags: <defaults>
</compile_context>

<pallas_src>
import functools

import jax
import jax.numpy as jnp
from jax.experimental import pallas as pl
from jax.experimental.pallas import tpu as pltpu


def _ensemble_kernel(x_ref, w1_ref, b1_ref, w2_ref, b2_ref, wh_ref, bh_ref,
                     out_ref, *, num_models, state_dim):
    x = x_ref[...]                                   # [B, S+A] f32
    bsz = x.shape[0]
    two_s = out_ref.shape[1]                         # 2 * state_dim

    # Lane mask selecting the "mean" half of the fused head output (hoisted
    # out of the model loop).
    is_mean = jax.lax.broadcasted_iota(jnp.int32, (bsz, two_s), 1) < state_dim

    acc = jnp.zeros((bsz, two_s), jnp.float32)

    # Static unroll over ensemble members: N is tiny and known at trace time.
    for n in range(num_models):
        # layer 1: relu(x @ W1 + b1)        (weights pre-transposed: [in, H])
        h = jnp.dot(x, w1_ref[n], preferred_element_type=jnp.float32)
        h = jnp.maximum(h + b1_ref[n], 0.0)          # b1_ref[n] is [1, H]

        # layer 2: linear (no activation)
        h = jnp.dot(h, w2_ref[n], preferred_element_type=jnp.float32) + b2_ref[n]

        # fused heads: [B, H] @ [H, 2S] -> [B, 2S]  (mean || stddev pre-act)
        o = jnp.dot(h, wh_ref[n], preferred_element_type=jnp.float32) + bh_ref[n]

        # mean half: clamp(-1000, 1000)
        mean_part = jnp.clip(o, -1000.0, 1000.0)
        # stddev half: softplus (torch default beta=1, threshold=20) + clamp
        sp = jnp.where(o > 20.0, o, jnp.log1p(jnp.exp(jnp.minimum(o, 20.0))))
        std_part = jnp.clip(sp, 1e-6, 1.0)

        acc = acc + jnp.where(is_mean, mean_part, std_part)

    # ensemble average, written once (lane-dense [B, 2S] slab)
    out_ref[...] = acc * (1.0 / num_models)


def ensemble_transition_forward(state, action, params):
    """state: [B, state_dim], action: [B, action_dim]. Returns (mean, stddev)."""
    w1, b1, w2, b2, wm, bm, ws, bs = params
    N, H, in_dim = w1.shape
    S = wm.shape[1]
    B = state.shape[0]

    x = jnp.concatenate(
        [state.astype(jnp.float32), action.astype(jnp.float32)], axis=-1)

    # Wrapper-side layout work (free for XLA): pre-transpose weights to
    # [N, in, out] and fuse the two heads into a single [N, H, 2S] matrix.
    w1t = jnp.transpose(w1, (0, 2, 1))                                   # [N, S+A, H]
    w2t = jnp.transpose(w2, (0, 2, 1))                                   # [N, H, H]
    wht = jnp.transpose(jnp.concatenate([wm, ws], axis=1), (0, 2, 1))    # [N, H, 2S]
    b1r = b1.reshape(N, 1, H)
    b2r = b2.reshape(N, 1, H)
    bhr = jnp.concatenate([bm, bs], axis=1).reshape(N, 1, 2 * S)         # [N, 1, 2S]

    kernel = functools.partial(_ensemble_kernel, num_models=N, state_dim=S)

    vmem = lambda: pl.BlockSpec(memory_space=pltpu.MemorySpace.VMEM)
    out = pl.pallas_call(
        kernel,
        out_shape=jax.ShapeDtypeStruct((B, 2 * S), jnp.float32),
        in_specs=[vmem() for _ in range(7)],
        out_specs=vmem(),
        compiler_params=pltpu.CompilerParams(vmem_limit_bytes=32 * 1024 * 1024),
    )(x, w1t, b1r, w2t, b2r, wht, bhr)

    mean = out[:, :S]
    stddev = out[:, S:]
    return mean, stddev


def init_params(key, state_dim, action_dim, hidden_dim, N):
    """Xavier-uniform weights, uniform(-1/sqrt(fan_in), 1/sqrt(fan_in)) biases."""
    def xavier(k, n, out_d, in_d):
        lim = jnp.sqrt(6.0 / (in_d + out_d))
        return jax.random.uniform(k, (n, out_d, in_d), jnp.float32, -lim, lim)

    def bias(k, n, out_d, in_d):
        lim = 1.0 / jnp.sqrt(in_d)
        return jax.random.uniform(k, (n, out_d), jnp.float32, -lim, lim)

    ks = jax.random.split(key, 8)
    in_dim = state_dim + action_dim
    w1 = xavier(ks[0], N, hidden_dim, in_dim)
    b1 = bias(ks[1], N, hidden_dim, in_dim)
    w2 = xavier(ks[2], N, hidden_dim, hidden_dim)
    b2 = bias(ks[3], N, hidden_dim, hidden_dim)
    wm = xavier(ks[4], N, state_dim, hidden_dim)
    bm = bias(ks[5], N, state_dim, hidden_dim)
    ws = xavier(ks[6], N, state_dim, hidden_dim)
    bs = bias(ks[7], N, state_dim, hidden_dim)
    return (w1, b1, w2, b2, wm, bm, ws, bs)


def reference_forward(state, action, params):
    """Pure-JAX reference mirroring the PyTorch module."""
    w1, b1, w2, b2, wm, bm, ws, bs = params
    x = jnp.concatenate([state, action], axis=-1).astype(jnp.float32)
    means, stds = [], []
    for n in range(w1.shape[0]):
        h = jnp.maximum(x @ w1[n].T + b1[n], 0.0)
        h = h @ w2[n].T + b2[n]
        m = jnp.clip(h @ wm[n].T + bm[n], -1000.0, 1000.0)
        s = h @ ws[n].T + bs[n]
        sp = jnp.where(s > 20.0, s, jnp.log1p(jnp.exp(jnp.minimum(s, 20.0))))
        stds.append(jnp.clip(sp, 1e-6, 1.0))
        means.append(m)
    return (jnp.mean(jnp.stack(means), axis=0),
            jnp.mean(jnp.stack(stds), axis=0))


if __name__ == "__main__":
    state_dim, action_dim, hidden_dim, N, batch = 8, 4, 32, 5, 2

    key = jax.random.PRNGKey(0)
    k_params, k_state, k_action = jax.random.split(key, 3)

    params = init_params(k_params, state_dim, action_dim, hidden_dim, N)
    state = jax.random.normal(k_state, (batch, state_dim), jnp.float32)
    action = jax.random.normal(k_action, (batch, action_dim), jnp.float32)

    # TODO(synk): train_model / get_next_state (optimizer loop, torch.randn
    # sampling) are host-side logic and are not part of the forward kernel.
    mean, stddev = ensemble_transition_forward(state, action, params)
    jax.block_until_ready((mean, stddev))

    ref_mean, ref_std = reference_forward(state, action, params)
    assert mean.shape == (batch, state_dim) and stddev.shape == (batch, state_dim)
    assert jnp.allclose(mean, ref_mean, atol=1e-5, rtol=1e-5)
    assert jnp.allclose(stddev, ref_std, atol=1e-5, rtol=1e-5)

    print("KERNEL_OK")
</pallas_src>

<mosaic_0001>
module attributes {stable_mosaic.version = 11 : i64} {
  func.func @_ensemble_kernel(%arg0: memref<2x12xf32, #tpu.memory_space<vmem>>, %arg1: memref<5x12x32xf32, #tpu.memory_space<vmem>>, %arg2: memref<5x1x32xf32, #tpu.memory_space<vmem>>, %arg3: memref<5x32x32xf32, #tpu.memory_space<vmem>>, %arg4: memref<5x1x32xf32, #tpu.memory_space<vmem>>, %arg5: memref<5x32x16xf32, #tpu.memory_space<vmem>>, %arg6: memref<5x1x16xf32, #tpu.memory_space<vmem>>, %arg7: memref<2x16xf32, #tpu.memory_space<vmem>>) attributes {dimension_semantics = [], scalar_prefetch = 0 : i64, scratch_operands = 0 : i64, tpu.core_type = #tpu.core_type<tc>} {
    %c0 = arith.constant 0 : index
    %c0_0 = arith.constant 0 : index
    %0 = vector.load %arg0[%c0, %c0_0] : memref<2x12xf32, #tpu.memory_space<vmem>>, vector<2x12xf32>
    %1 = tpu.iota {dimensions = array<i32: 1>} : vector<2x16xi32>
    %c8_i32 = arith.constant 8 : i32
    %2 = vector.broadcast %c8_i32 : i32 to vector<2x16xi32>
    %3 = arith.cmpi slt, %1, %2 : vector<2x16xi32>
    %cst = arith.constant 0.000000e+00 : f32
    %4 = vector.broadcast %cst : f32 to vector<2x16xf32>
    %c0_1 = arith.constant 0 : index
    %c0_2 = arith.constant 0 : index
    %c0_3 = arith.constant 0 : index
    %5 = vector.load %arg1[%c0_1, %c0_2, %c0_3] : memref<5x12x32xf32, #tpu.memory_space<vmem>>, vector<1x12x32xf32>
    %6 = vector.shape_cast %5 : vector<1x12x32xf32> to vector<12x32xf32>
    %cst_4 = arith.constant dense<0.000000e+00> : vector<2x32xf32>
    %7 = tpu.matmul %0, %6, %cst_4 {dimension_numbers = #tpu.dot_dimension_numbers<[1], [0], [0], [1], [0, 0, 1, 1], [], []>} : vector<2x12xf32>, vector<12x32xf32>, vector<2x32xf32> -> vector<2x32xf32>
    %c0_5 = arith.constant 0 : index
    %c0_6 = arith.constant 0 : index
    %c0_7 = arith.constant 0 : index
    %8 = vector.load %arg2[%c0_5, %c0_6, %c0_7] : memref<5x1x32xf32, #tpu.memory_space<vmem>>, vector<1x1x32xf32>
    %9 = vector.shape_cast %8 : vector<1x1x32xf32> to vector<1x32xf32>
    %10 = vector.broadcast %9 : vector<1x32xf32> to vector<2x32xf32>
    %11 = arith.addf %7, %10 : vector<2x32xf32>
    %cst_8 = arith.constant 0.000000e+00 : f32
    %12 = vector.broadcast %cst_8 : f32 to vector<2x32xf32>
    %13 = arith.maximumf %11, %12 : vector<2x32xf32>
    %c0_9 = arith.constant 0 : index
    %c0_10 = arith.constant 0 : index
    %c0_11 = arith.constant 0 : index
    %14 = vector.load %arg3[%c0_9, %c0_10, %c0_11] : memref<5x32x32xf32, #tpu.memory_space<vmem>>, vector<1x32x32xf32>
    %15 = vector.shape_cast %14 : vector<1x32x32xf32> to vector<32x32xf32>
    %cst_12 = arith.constant dense<0.000000e+00> : vector<2x32xf32>
    %16 = tpu.matmul %13, %15, %cst_12 {dimension_numbers = #tpu.dot_dimension_numbers<[1], [0], [0], [1], [0, 0, 1, 1], [], []>} : vector<2x32xf32>, vector<32x32xf32>, vector<2x32xf32> -> vector<2x32xf32>
    %c0_13 = arith.constant 0 : index
    %c0_14 = arith.constant 0 : index
    %c0_15 = arith.constant 0 : index
    %17 = vector.load %arg4[%c0_13, %c0_14, %c0_15] : memref<5x1x32xf32, #tpu.memory_space<vmem>>, vector<1x1x32xf32>
    %18 = vector.shape_cast %17 : vector<1x1x32xf32> to vector<1x32xf32>
    %19 = vector.broadcast %18 : vector<1x32xf32> to vector<2x32xf32>
    %20 = arith.addf %16, %19 : vector<2x32xf32>
    %c0_16 = arith.constant 0 : index
    %c0_17 = arith.constant 0 : index
    %c0_18 = arith.constant 0 : index
    %21 = vector.load %arg5[%c0_16, %c0_17, %c0_18] : memref<5x32x16xf32, #tpu.memory_space<vmem>>, vector<1x32x16xf32>
    %22 = vector.shape_cast %21 : vector<1x32x16xf32> to vector<32x16xf32>
    %cst_19 = arith.constant dense<0.000000e+00> : vector<2x16xf32>
    %23 = tpu.matmul %20, %22, %cst_19 {dimension_numbers = #tpu.dot_dimension_numbers<[1], [0], [0], [1], [0, 0, 1, 1], [], []>} : vector<2x32xf32>, vector<32x16xf32>, vector<2x16xf32> -> vector<2x16xf32>
    %c0_20 = arith.constant 0 : index
    %c0_21 = arith.constant 0 : index
    %c0_22 = arith.constant 0 : index
    %24 = vector.load %arg6[%c0_20, %c0_21, %c0_22] : memref<5x1x16xf32, #tpu.memory_space<vmem>>, vector<1x1x16xf32>
    %25 = vector.shape_cast %24 : vector<1x1x16xf32> to vector<1x16xf32>
    %26 = vector.broadcast %25 : vector<1x16xf32> to vector<2x16xf32>
    %27 = arith.addf %23, %26 : vector<2x16xf32>
    %cst_23 = arith.constant -1.000000e+03 : f32
    %cst_24 = arith.constant 1.000000e+03 : f32
    %28 = vector.broadcast %cst_23 : f32 to vector<2x16xf32>
    %29 = arith.maximumf %28, %27 : vector<2x16xf32>
    %30 = vector.broadcast %cst_24 : f32 to vector<2x16xf32>
    %31 = arith.minimumf %30, %29 : vector<2x16xf32>
    %cst_25 = arith.constant 2.000000e+01 : f32
    %32 = vector.broadcast %cst_25 : f32 to vector<2x16xf32>
    %33 = arith.cmpf ogt, %27, %32 : vector<2x16xf32>
    %cst_26 = arith.constant 2.000000e+01 : f32
    %34 = vector.broadcast %cst_26 : f32 to vector<2x16xf32>
    %35 = arith.minimumf %27, %34 : vector<2x16xf32>
    %36 = math.exp %35 : vector<2x16xf32>
    %37 = math.log1p %36 : vector<2x16xf32>
    %38 = arith.select %33, %27, %37 : vector<2x16xi1>, vector<2x16xf32>
    %cst_27 = arith.constant 9.99999997E-7 : f32
    %cst_28 = arith.constant 1.000000e+00 : f32
    %39 = vector.broadcast %cst_27 : f32 to vector<2x16xf32>
    %40 = arith.maximumf %39, %38 : vector<2x16xf32>
    %41 = vector.broadcast %cst_28 : f32 to vector<2x16xf32>
    %42 = arith.minimumf %41, %40 : vector<2x16xf32>
    %43 = arith.select %3, %31, %42 : vector<2x16xi1>, vector<2x16xf32>
    %44 = arith.addf %4, %43 : vector<2x16xf32>
    %c1 = arith.constant 1 : index
    %c0_29 = arith.constant 0 : index
    %c0_30 = arith.constant 0 : index
    %45 = vector.load %arg1[%c1, %c0_29, %c0_30] : memref<5x12x32xf32, #tpu.memory_space<vmem>>, vector<1x12x32xf32>
    %46 = vector.shape_cast %45 : vector<1x12x32xf32> to vector<12x32xf32>
    %cst_31 = arith.constant dense<0.000000e+00> : vector<2x32xf32>
    %47 = tpu.matmul %0, %46, %cst_31 {dimension_numbers = #tpu.dot_dimension_numbers<[1], [0], [0], [1], [0, 0, 1, 1], [], []>} : vector<2x12xf32>, vector<12x32xf32>, vector<2x32xf32> -> vector<2x32xf32>
    %c1_32 = arith.constant 1 : index
    %c0_33 = arith.constant 0 : index
    %c0_34 = arith.constant 0 : index
    %48 = vector.load %arg2[%c1_32, %c0_33, %c0_34] : memref<5x1x32xf32, #tpu.memory_space<vmem>>, vector<1x1x32xf32>
    %49 = vector.shape_cast %48 : vector<1x1x32xf32> to vector<1x32xf32>
    %50 = vector.broadcast %49 : vector<1x32xf32> to vector<2x32xf32>
    %51 = arith.addf %47, %50 : vector<2x32xf32>
    %cst_35 = arith.constant 0.000000e+00 : f32
    %52 = vector.broadcast %cst_35 : f32 to vector<2x32xf32>
    %53 = arith.maximumf %51, %52 : vector<2x32xf32>
    %c1_36 = arith.constant 1 : index
    %c0_37 = arith.constant 0 : index
    %c0_38 = arith.constant 0 : index
    %54 = vector.load %arg3[%c1_36, %c0_37, %c0_38] : memref<5x32x32xf32, #tpu.memory_space<vmem>>, vector<1x32x32xf32>
    %55 = vector.shape_cast %54 : vector<1x32x32xf32> to vector<32x32xf32>
    %cst_39 = arith.constant dense<0.000000e+00> : vector<2x32xf32>
    %56 = tpu.matmul %53, %55, %cst_39 {dimension_numbers = #tpu.dot_dimension_numbers<[1], [0], [0], [1], [0, 0, 1, 1], [], []>} : vector<2x32xf32>, vector<32x32xf32>, vector<2x32xf32> -> vector<2x32xf32>
    %c1_40 = arith.constant 1 : index
    %c0_41 = arith.constant 0 : index
    %c0_42 = arith.constant 0 : index
    %57 = vector.load %arg4[%c1_40, %c0_41, %c0_42] : memref<5x1x32xf32, #tpu.memory_space<vmem>>, vector<1x1x32xf32>
    %58 = vector.shape_cast %57 : vector<1x1x32xf32> to vector<1x32xf32>
    %59 = vector.broadcast %58 : vector<1x32xf32> to vector<2x32xf32>
    %60 = arith.addf %56, %59 : vector<2x32xf32>
    %c1_43 = arith.constant 1 : index
    %c0_44 = arith.constant 0 : index
    %c0_45 = arith.constant 0 : index
    %61 = vector.load %arg5[%c1_43, %c0_44, %c0_45] : memref<5x32x16xf32, #tpu.memory_space<vmem>>, vector<1x32x16xf32>
    %62 = vector.shape_cast %61 : vector<1x32x16xf32> to vector<32x16xf32>
    %cst_46 = arith.constant dense<0.000000e+00> : vector<2x16xf32>
    %63 = tpu.matmul %60, %62, %cst_46 {dimension_numbers = #tpu.dot_dimension_numbers<[1], [0], [0], [1], [0, 0, 1, 1], [], []>} : vector<2x32xf32>, vector<32x16xf32>, vector<2x16xf32> -> vector<2x16xf32>
    %c1_47 = arith.constant 1 : index
    %c0_48 = arith.constant 0 : index
    %c0_49 = arith.constant 0 : index
    %64 = vector.load %arg6[%c1_47, %c0_48, %c0_49] : memref<5x1x16xf32, #tpu.memory_space<vmem>>, vector<1x1x16xf32>
    %65 = vector.shape_cast %64 : vector<1x1x16xf32> to vector<1x16xf32>
    %66 = vector.broadcast %65 : vector<1x16xf32> to vector<2x16xf32>
    %67 = arith.addf %63, %66 : vector<2x16xf32>
    %cst_50 = arith.constant -1.000000e+03 : f32
    %cst_51 = arith.constant 1.000000e+03 : f32
    %68 = vector.broadcast %cst_50 : f32 to vector<2x16xf32>
    %69 = arith.maximumf %68, %67 : vector<2x16xf32>
    %70 = vector.broadcast %cst_51 : f32 to vector<2x16xf32>
    %71 = arith.minimumf %70, %69 : vector<2x16xf32>
    %cst_52 = arith.constant 2.000000e+01 : f32
    %72 = vector.broadcast %cst_52 : f32 to vector<2x16xf32>
    %73 = arith.cmpf ogt, %67, %72 : vector<2x16xf32>
    %cst_53 = arith.constant 2.000000e+01 : f32
    %74 = vector.broadcast %cst_53 : f32 to vector<2x16xf32>
    %75 = arith.minimumf %67, %74 : vector<2x16xf32>
    %76 = math.exp %75 : vector<2x16xf32>
    %77 = math.log1p %76 : vector<2x16xf32>
    %78 = arith.select %73, %67, %77 : vector<2x16xi1>, vector<2x16xf32>
    %cst_54 = arith.constant 9.99999997E-7 : f32
    %cst_55 = arith.constant 1.000000e+00 : f32
    %79 = vector.broadcast %cst_54 : f32 to vector<2x16xf32>
    %80 = arith.maximumf %79, %78 : vector<2x16xf32>
    %81 = vector.broadcast %cst_55 : f32 to vector<2x16xf32>
    %82 = arith.minimumf %81, %80 : vector<2x16xf32>
    %83 = arith.select %3, %71, %82 : vector<2x16xi1>, vector<2x16xf32>
    %84 = arith.addf %44, %83 : vector<2x16xf32>
    %c2 = arith.constant 2 : index
    %c0_56 = arith.constant 0 : index
    %c0_57 = arith.constant 0 : index
    %85 = vector.load %arg1[%c2, %c0_56, %c0_57] : memref<5x12x32xf32, #tpu.memory_space<vmem>>, vector<1x12x32xf32>
    %86 = vector.shape_cast %85 : vector<1x12x32xf32> to vector<12x32xf32>
    %cst_58 = arith.constant dense<0.000000e+00> : vector<2x32xf32>
    %87 = tpu.matmul %0, %86, %cst_58 {dimension_numbers = #tpu.dot_dimension_numbers<[1], [0], [0], [1], [0, 0, 1, 1], [], []>} : vector<2x12xf32>, vector<12x32xf32>, vector<2x32xf32> -> vector<2x32xf32>
    %c2_59 = arith.constant 2 : index
    %c0_60 = arith.constant 0 : index
    %c0_61 = arith.constant 0 : index
    %88 = vector.load %arg2[%c2_59, %c0_60, %c0_61] : memref<5x1x32xf32, #tpu.memory_space<vmem>>, vector<1x1x32xf32>
    %89 = vector.shape_cast %88 : vector<1x1x32xf32> to vector<1x32xf32>
    %90 = vector.broadcast %89 : vector<1x32xf32> to vector<2x32xf32>
    %91 = arith.addf %87, %90 : vector<2x32xf32>
    %cst_62 = arith.constant 0.000000e+00 : f32
    %92 = vector.broadcast %cst_62 : f32 to vector<2x32xf32>
    %93 = arith.maximumf %91, %92 : vector<2x32xf32>
    %c2_63 = arith.constant 2 : index
    %c0_64 = arith.constant 0 : index
    %c0_65 = arith.constant 0 : index
    %94 = vector.load %arg3[%c2_63, %c0_64, %c0_65] : memref<5x32x32xf32, #tpu.memory_space<vmem>>, vector<1x32x32xf32>
    %95 = vector.shape_cast %94 : vector<1x32x32xf32> to vector<32x32xf32>
    %cst_66 = arith.constant dense<0.000000e+00> : vector<2x32xf32>
    %96 = tpu.matmul %93, %95, %cst_66 {dimension_numbers = #tpu.dot_dimension_numbers<[1], [0], [0], [1], [0, 0, 1, 1], [], []>} : vector<2x32xf32>, vector<32x32xf32>, vector<2x32xf32> -> vector<2x32xf32>
    %c2_67 = arith.constant 2 : index
    %c0_68 = arith.constant 0 : index
    %c0_69 = arith.constant 0 : index
    %97 = vector.load %arg4[%c2_67, %c0_68, %c0_69] : memref<5x1x32xf32, #tpu.memory_space<vmem>>, vector<1x1x32xf32>
    %98 = vector.shape_cast %97 : vector<1x1x32xf32> to vector<1x32xf32>
    %99 = vector.broadcast %98 : vector<1x32xf32> to vector<2x32xf32>
    %100 = arith.addf %96, %99 : vector<2x32xf32>
    %c2_70 = arith.constant 2 : index
    %c0_71 = arith.constant 0 : index
    %c0_72 = arith.constant 0 : index
    %101 = vector.load %arg5[%c2_70, %c0_71, %c0_72] : memref<5x32x16xf32, #tpu.memory_space<vmem>>, vector<1x32x16xf32>
    %102 = vector.shape_cast %101 : vector<1x32x16xf32> to vector<32x16xf32>
    %cst_73 = arith.constant dense<0.000000e+00> : vector<2x16xf32>
    %103 = tpu.matmul %100, %102, %cst_73 {dimension_numbers = #tpu.dot_dimension_numbers<[1], [0], [0], [1], [0, 0, 1, 1], [], []>} : vector<2x32xf32>, vector<32x16xf32>, vector<2x16xf32> -> vector<2x16xf32>
    %c2_74 = arith.constant 2 : index
    %c0_75 = arith.constant 0 : index
    %c0_76 = arith.constant 0 : index
    %104 = vector.load %arg6[%c2_74, %c0_75, %c0_76] : memref<5x1x16xf32, #tpu.memory_space<vmem>>, vector<1x1x16xf32>
    %105 = vector.shape_cast %104 : vector<1x1x16xf32> to vector<1x16xf32>
    %106 = vector.broadcast %105 : vector<1x16xf32> to vector<2x16xf32>
    %107 = arith.addf %103, %106 : vector<2x16xf32>
    %cst_77 = arith.constant -1.000000e+03 : f32
    %cst_78 = arith.constant 1.000000e+03 : f32
    %108 = vector.broadcast %cst_77 : f32 to vector<2x16xf32>
    %109 = arith.maximumf %108, %107 : vector<2x16xf32>
    %110 = vector.broadcast %cst_78 : f32 to vector<2x16xf32>
    %111 = arith.minimumf %110, %109 : vector<2x16xf32>
    %cst_79 = arith.constant 2.000000e+01 : f32
    %112 = vector.broadcast %cst_79 : f32 to vector<2x16xf32>
    %113 = arith.cmpf ogt, %107, %112 : vector<2x16xf32>
    %cst_80 = arith.constant 2.000000e+01 : f32
    %114 = vector.broadcast %cst_80 : f32 to vector<2x16xf32>
    %115 = arith.minimumf %107, %114 : vector<2x16xf32>
    %116 = math.exp %115 : vector<2x16xf32>
    %117 = math.log1p %116 : vector<2x16xf32>
    %118 = arith.select %113, %107, %117 : vector<2x16xi1>, vector<2x16xf32>
    %cst_81 = arith.constant 9.99999997E-7 : f32
    %cst_82 = arith.constant 1.000000e+00 : f32
    %119 = vector.broadcast %cst_81 : f32 to vector<2x16xf32>
    %120 = arith.maximumf %119, %118 : vector<2x16xf32>
    %121 = vector.broadcast %cst_82 : f32 to vector<2x16xf32>
    %122 = arith.minimumf %121, %120 : vector<2x16xf32>
    %123 = arith.select %3, %111, %122 : vector<2x16xi1>, vector<2x16xf32>
    %124 = arith.addf %84, %123 : vector<2x16xf32>
    %c3 = arith.constant 3 : index
    %c0_83 = arith.constant 0 : index
    %c0_84 = arith.constant 0 : index
    %125 = vector.load %arg1[%c3, %c0_83, %c0_84] : memref<5x12x32xf32, #tpu.memory_space<vmem>>, vector<1x12x32xf32>
    %126 = vector.shape_cast %125 : vector<1x12x32xf32> to vector<12x32xf32>
    %cst_85 = arith.constant dense<0.000000e+00> : vector<2x32xf32>
    %127 = tpu.matmul %0, %126, %cst_85 {dimension_numbers = #tpu.dot_dimension_numbers<[1], [0], [0], [1], [0, 0, 1, 1], [], []>} : vector<2x12xf32>, vector<12x32xf32>, vector<2x32xf32> -> vector<2x32xf32>
    %c3_86 = arith.constant 3 : index
    %c0_87 = arith.constant 0 : index
    %c0_88 = arith.constant 0 : index
    %128 = vector.load %arg2[%c3_86, %c0_87, %c0_88] : memref<5x1x32xf32, #tpu.memory_space<vmem>>, vector<1x1x32xf32>
    %129 = vector.shape_cast %128 : vector<1x1x32xf32> to vector<1x32xf32>
    %130 = vector.broadcast %129 : vector<1x32xf32> to vector<2x32xf32>
    %131 = arith.addf %127, %130 : vector<2x32xf32>
    %cst_89 = arith.constant 0.000000e+00 : f32
    %132 = vector.broadcast %cst_89 : f32 to vector<2x32xf32>
    %133 = arith.maximumf %131, %132 : vector<2x32xf32>
    %c3_90 = arith.constant 3 : index
    %c0_91 = arith.constant 0 : index
    %c0_92 = arith.constant 0 : index
    %134 = vector.load %arg3[%c3_90, %c0_91, %c0_92] : memref<5x32x32xf32, #tpu.memory_space<vmem>>, vector<1x32x32xf32>
    %135 = vector.shape_cast %134 : vector<1x32x32xf32> to vector<32x32xf32>
    %cst_93 = arith.constant dense<0.000000e+00> : vector<2x32xf32>
    %136 = tpu.matmul %133, %135, %cst_93 {dimension_numbers = #tpu.dot_dimension_numbers<[1], [0], [0], [1], [0, 0, 1, 1], [], []>} : vector<2x32xf32>, vector<32x32xf32>, vector<2x32xf32> -> vector<2x32xf32>
    %c3_94 = arith.constant 3 : index
    %c0_95 = arith.constant 0 : index
    %c0_96 = arith.constant 0 : index
    %137 = vector.load %arg4[%c3_94, %c0_95, %c0_96] : memref<5x1x32xf32, #tpu.memory_space<vmem>>, vector<1x1x32xf32>
    %138 = vector.shape_cast %137 : vector<1x1x32xf32> to vector<1x32xf32>
    %139 = vector.broadcast %138 : vector<1x32xf32> to vector<2x32xf32>
    %140 = arith.addf %136, %139 : vector<2x32xf32>
    %c3_97 = arith.constant 3 : index
    %c0_98 = arith.constant 0 : index
    %c0_99 = arith.constant 0 : index
    %141 = vector.load %arg5[%c3_97, %c0_98, %c0_99] : memref<5x32x16xf32, #tpu.memory_space<vmem>>, vector<1x32x16xf32>
    %142 = vector.shape_cast %141 : vector<1x32x16xf32> to vector<32x16xf32>
    %cst_100 = arith.constant dense<0.000000e+00> : vector<2x16xf32>
    %143 = tpu.matmul %140, %142, %cst_100 {dimension_numbers = #tpu.dot_dimension_numbers<[1], [0], [0], [1], [0, 0, 1, 1], [], []>} : vector<2x32xf32>, vector<32x16xf32>, vector<2x16xf32> -> vector<2x16xf32>
    %c3_101 = arith.constant 3 : index
    %c0_102 = arith.constant 0 : index
    %c0_103 = arith.constant 0 : index
    %144 = vector.load %arg6[%c3_101, %c0_102, %c0_103] : memref<5x1x16xf32, #tpu.memory_space<vmem>>, vector<1x1x16xf32>
    %145 = vector.shape_cast %144 : vector<1x1x16xf32> to vector<1x16xf32>
    %146 = vector.broadcast %145 : vector<1x16xf32> to vector<2x16xf32>
    %147 = arith.addf %143, %146 : vector<2x16xf32>
    %cst_104 = arith.constant -1.000000e+03 : f32
    %cst_105 = arith.constant 1.000000e+03 : f32
    %148 = vector.broadcast %cst_104 : f32 to vector<2x16xf32>
    %149 = arith.maximumf %148, %147 : vector<2x16xf32>
    %150 = vector.broadcast %cst_105 : f32 to vector<2x16xf32>
    %151 = arith.minimumf %150, %149 : vector<2x16xf32>
    %cst_106 = arith.constant 2.000000e+01 : f32
    %152 = vector.broadcast %cst_106 : f32 to vector<2x16xf32>
    %153 = arith.cmpf ogt, %147, %152 : vector<2x16xf32>
    %cst_107 = arith.constant 2.000000e+01 : f32
    %154 = vector.broadcast %cst_107 : f32 to vector<2x16xf32>
    %155 = arith.minimumf %147, %154 : vector<2x16xf32>
    %156 = math.exp %155 : vector<2x16xf32>
    %157 = math.log1p %156 : vector<2x16xf32>
    %158 = arith.select %153, %147, %157 : vector<2x16xi1>, vector<2x16xf32>
    %cst_108 = arith.constant 9.99999997E-7 : f32
    %cst_109 = arith.constant 1.000000e+00 : f32
    %159 = vector.broadcast %cst_108 : f32 to vector<2x16xf32>
    %160 = arith.maximumf %159, %158 : vector<2x16xf32>
    %161 = vector.broadcast %cst_109 : f32 to vector<2x16xf32>
    %162 = arith.minimumf %161, %160 : vector<2x16xf32>
    %163 = arith.select %3, %151, %162 : vector<2x16xi1>, vector<2x16xf32>
    %164 = arith.addf %124, %163 : vector<2x16xf32>
    %c4 = arith.constant 4 : index
    %c0_110 = arith.constant 0 : index
    %c0_111 = arith.constant 0 : index
    %165 = vector.load %arg1[%c4, %c0_110, %c0_111] : memref<5x12x32xf32, #tpu.memory_space<vmem>>, vector<1x12x32xf32>
    %166 = vector.shape_cast %165 : vector<1x12x32xf32> to vector<12x32xf32>
    %cst_112 = arith.constant dense<0.000000e+00> : vector<2x32xf32>
    %167 = tpu.matmul %0, %166, %cst_112 {dimension_numbers = #tpu.dot_dimension_numbers<[1], [0], [0], [1], [0, 0, 1, 1], [], []>} : vector<2x12xf32>, vector<12x32xf32>, vector<2x32xf32> -> vector<2x32xf32>
    %c4_113 = arith.constant 4 : index
    %c0_114 = arith.constant 0 : index
    %c0_115 = arith.constant 0 : index
    %168 = vector.load %arg2[%c4_113, %c0_114, %c0_115] : memref<5x1x32xf32, #tpu.memory_space<vmem>>, vector<1x1x32xf32>
    %169 = vector.shape_cast %168 : vector<1x1x32xf32> to vector<1x32xf32>
    %170 = vector.broadcast %169 : vector<1x32xf32> to vector<2x32xf32>
    %171 = arith.addf %167, %170 : vector<2x32xf32>
    %cst_116 = arith.constant 0.000000e+00 : f32
    %172 = vector.broadcast %cst_116 : f32 to vector<2x32xf32>
    %173 = arith.maximumf %171, %172 : vector<2x32xf32>
    %c4_117 = arith.constant 4 : index
    %c0_118 = arith.constant 0 : index
    %c0_119 = arith.constant 0 : index
    %174 = vector.load %arg3[%c4_117, %c0_118, %c0_119] : memref<5x32x32xf32, #tpu.memory_space<vmem>>, vector<1x32x32xf32>
    %175 = vector.shape_cast %174 : vector<1x32x32xf32> to vector<32x32xf32>
    %cst_120 = arith.constant dense<0.000000e+00> : vector<2x32xf32>
    %176 = tpu.matmul %173, %175, %cst_120 {dimension_numbers = #tpu.dot_dimension_numbers<[1], [0], [0], [1], [0, 0, 1, 1], [], []>} : vector<2x32xf32>, vector<32x32xf32>, vector<2x32xf32> -> vector<2x32xf32>
    %c4_121 = arith.constant 4 : index
    %c0_122 = arith.constant 0 : index
    %c0_123 = arith.constant 0 : index
    %177 = vector.load %arg4[%c4_121, %c0_122, %c0_123] : memref<5x1x32xf32, #tpu.memory_space<vmem>>, vector<1x1x32xf32>
    %178 = vector.shape_cast %177 : vector<1x1x32xf32> to vector<1x32xf32>
    %179 = vector.broadcast %178 : vector<1x32xf32> to vector<2x32xf32>
    %180 = arith.addf %176, %179 : vector<2x32xf32>
    %c4_124 = arith.constant 4 : index
    %c0_125 = arith.constant 0 : index
    %c0_126 = arith.constant 0 : index
    %181 = vector.load %arg5[%c4_124, %c0_125, %c0_126] : memref<5x32x16xf32, #tpu.memory_space<vmem>>, vector<1x32x16xf32>
    %182 = vector.shape_cast %181 : vector<1x32x16xf32> to vector<32x16xf32>
    %cst_127 = arith.constant dense<0.000000e+00> : vector<2x16xf32>
    %183 = tpu.matmul %180, %182, %cst_127 {dimension_numbers = #tpu.dot_dimension_numbers<[1], [0], [0], [1], [0, 0, 1, 1], [], []>} : vector<2x32xf32>, vector<32x16xf32>, vector<2x16xf32> -> vector<2x16xf32>
    %c4_128 = arith.constant 4 : index
    %c0_129 = arith.constant 0 : index
    %c0_130 = arith.constant 0 : index
    %184 = vector.load %arg6[%c4_128, %c0_129, %c0_130] : memref<5x1x16xf32, #tpu.memory_space<vmem>>, vector<1x1x16xf32>
    %185 = vector.shape_cast %184 : vector<1x1x16xf32> to vector<1x16xf32>
    %186 = vector.broadcast %185 : vector<1x16xf32> to vector<2x16xf32>
    %187 = arith.addf %183, %186 : vector<2x16xf32>
    %cst_131 = arith.constant -1.000000e+03 : f32
    %cst_132 = arith.constant 1.000000e+03 : f32
    %188 = vector.broadcast %cst_131 : f32 to vector<2x16xf32>
    %189 = arith.maximumf %188, %187 : vector<2x16xf32>
    %190 = vector.broadcast %cst_132 : f32 to vector<2x16xf32>
    %191 = arith.minimumf %190, %189 : vector<2x16xf32>
    %cst_133 = arith.constant 2.000000e+01 : f32
    %192 = vector.broadcast %cst_133 : f32 to vector<2x16xf32>
    %193 = arith.cmpf ogt, %187, %192 : vector<2x16xf32>
    %cst_134 = arith.constant 2.000000e+01 : f32
    %194 = vector.broadcast %cst_134 : f32 to vector<2x16xf32>
    %195 = arith.minimumf %187, %194 : vector<2x16xf32>
    %196 = math.exp %195 : vector<2x16xf32>
    %197 = math.log1p %196 : vector<2x16xf32>
    %198 = arith.select %193, %187, %197 : vector<2x16xi1>, vector<2x16xf32>
    %cst_135 = arith.constant 9.99999997E-7 : f32
    %cst_136 = arith.constant 1.000000e+00 : f32
    %199 = vector.broadcast %cst_135 : f32 to vector<2x16xf32>
    %200 = arith.maximumf %199, %198 : vector<2x16xf32>
    %201 = vector.broadcast %cst_136 : f32 to vector<2x16xf32>
    %202 = arith.minimumf %201, %200 : vector<2x16xf32>
    %203 = arith.select %3, %191, %202 : vector<2x16xi1>, vector<2x16xf32>
    %204 = arith.addf %164, %203 : vector<2x16xf32>
    %cst_137 = arith.constant 2.000000e-01 : f32
    %205 = vector.broadcast %cst_137 : f32 to vector<2x16xf32>
    %206 = arith.mulf %204, %205 : vector<2x16xf32>
    %c0_138 = arith.constant 0 : index
    %c0_139 = arith.constant 0 : index
    %207 = vector.load %arg7[%c0_138, %c0_139] : memref<2x16xf32, #tpu.memory_space<vmem>>, vector<2x16xf32>
    tpu.vector_store %arg7[%c0_138, %c0_139], %206 {strides = array<i32>} : memref<2x16xf32, #tpu.memory_space<vmem>>, vector<2x16xf32>,
    return
  }
}

</mosaic_0001>

<bundles_post_ra>
// kernel: tpu_custom_call.1
= control target key start
LH: loop header
LB: loop body
LE: loop exit
PB: predicated region body
PF: predicated region fallthrough
CT: control target
= control target key end

     0   :  { %12 = vsyncpa [#allocation3], 0  ;;  %s1162_s0 = inlined_call_operand.hbm [shape: f32[2,12], index: 0, kind: input, shape index: {}]   ;;  %s1163_s1 = inlined_call_operand.vmem [shape: f32[5,12,32], index: 1, kind: input, shape index: {}]   ;;  %s1164_s2 = inlined_call_operand.hbm [shape: f32[5,1,32], index: 2, kind: input, shape index: {}]   ;;  %s1165_s3 = inlined_call_operand.vmem [shape: f32[5,32,32], index: 3, kind: input, shape index: {}]   ;;  %s1166_s4 = inlined_call_operand.hbm [shape: f32[5,1,32], index: 4, kind: input, shape index: {}]   ;;  %s1167_s5 = inlined_call_operand.vmem [shape: f32[5,32,16], index: 5, kind: input, shape index: {}]   ;;  %s1168_s6 = inlined_call_operand.vmem [shape: f32[5,1,16], index: 6, kind: input, shape index: {}]   ;;  %s1169_s7 = inlined_call_operand.hbm [shape: f32[2,16], index: 7, kind: output, shape index: {}]  }
   0x1   :  { %13 = vsyncpa [#allocation6], 0  ;;  %s32_s26 = sshll.u32 %s1164_s2, 4  ;;  %s33_s26 = int_to_ptr.hbm [resolvable:$true] %s32_s26 }
   0x2   :  { %14 = vsyncpa [#allocation4], 0  ;;  %s899_s27 = smov [#allocation5]   ;;  %s20_s8 = sshll.u32 %s1162_s0, 4  ;;  %s21_s8 = int_to_ptr.hbm [resolvable:$true] %s20_s8 }
   0x3   :  { %s34_s28 = sshll.u32 %s899_s27, 4  ;;  %s900_s9 = smov 16   ;;  %s35_s28 = int_to_ptr.vmem [resolvable:$true] %s34_s28 }
   0x4   :  { %s901_s10 = smov 1   ;;  %s902_s11 = smov [#allocation2]  }
   0x5   :  { %40 = dma.hbm_to_vmem [thread:$0]  %s33_s26, 80, %s35_s28, [#allocation6], %s900_s9, %s900_s9, %s901_s10  }
   0x6   :  { %s22_s12 = sshll.u32 %s902_s11, 4  ;;  %s47_s15 = sshll.u32 %s1166_s4, 4  ;;  %s23_s12 = int_to_ptr.vmem [resolvable:$true] %s22_s12  ;;  %s48_s15 = int_to_ptr.hbm [resolvable:$true] %s47_s15 }
   0x7   :  { %25 = dma.hbm_to_vmem [thread:$0]  %s21_s8, 32, %s23_s12, [#allocation3]  }
   0x8   :  { %s903_s2 = smov [#allocation7]  }
   0x9   :  { %s49_s16 = sshll.u32 %s903_s2, 4  ;;  %s50_s16 = int_to_ptr.vmem [resolvable:$true] %s49_s16 }
   0xa   :  { %55 = dma.hbm_to_vmem [thread:$0]  %s48_s15, 80, %s50_s16, [#allocation6], %s900_s9, %s900_s9, %s901_s10  }
   0xb   :  { %893 = dma.done.wait [#allocation3], 32  }
   0xc   :  { %894 = vsyncadd [#allocation3], 4294967264 }
   0xd   :  { %895 = dma.done.wait [#allocation6], 160  }
   0xe   :  { %896 = vsyncadd [#allocation6], 4294967136  ;;  %vm86_vm0 = vcmask 1043456   ;;  %v77_v0 = vld [vmem:[%s1163_s1 + $0x8] sm:$0xf]  ;;  %v76_v2 = vld [vmem:[%s1163_s1] sm:$0xff] }
   0xf   :  { %v693_v1 = vld [vmem:[%s1163_s1 + $0x18] sm:$0xf]  ;;  %687 = vmatpush.msk.msra.mxu0 %vm86_vm0, %v77_v0  ;;  %v692_v3 = vld [vmem:[%s1163_s1 + $0x10] sm:$0xff]  ;;  %v968_v4 = vld [vmem:[#allocation2] sm:$0x3]  ;;  %vm82_vm1 = vcmask 97280  }
  0x10   :  { %694 = vmatpush.msk.msra.mxu3 %vm86_vm0, %v693_v1  ;;  %v114_v5 = vld [vmem:[%s1165_s3 + $0x18] sm:$0xff]  ;;  %v113_v6 = vld [vmem:[%s1165_s3 + $0x10] sm:$0xff]  ;;  %v112_v7 = vld [vmem:[%s1165_s3 + $0x8] sm:$0xff]  ;;  %vm119_vm2 = vcmask 261120   ;;  %s676_s20 = sshll.u32 %s1169_s7, 4  ;;  %vm667_vm14 = vcmask 123904   ;;  %s677_s20 = int_to_ptr.hbm [resolvable:$true] %s676_s20 }
  0x11   :  { %135 = vmatpush.msra.mxu1 %v114_v5  ;;  %105 = vmatpush.msra.mxu0 %v76_v2  ;;  %v111_v8 = vld [vmem:[%s1165_s3] sm:$0xff]  ;;  %v699_v9 = vld [vmem:[%s1165_s3 + $0x38] sm:$0xff]  ;;  %v709_v10 = vld [vmem:[%s1163_s1 + $0x28] sm:$0xf] }
  0x12   :  { %220 = vmatpush.msra.mxu3 %v692_v3  ;;  %688 = vmatmul.msk.f32.vlgmr.msra.gmra.mxu0 %vm82_vm1, %v968_v4  ;;  %v698_v11 = vld [vmem:[%s1165_s3 + $0x30] sm:$0xff]  ;;  %v697_v12 = vld [vmem:[%s1165_s3 + $0x28] sm:$0xff]  ;;  %v708_v13 = vld [vmem:[%s1163_s1 + $0x20] sm:$0xff] }
  0x13   :  { %695 = vmatmul.msk.f32.vlgmr.msra.gmra.mxu3 %vm82_vm1, %v968_v4  ;;  %136 = vmatpush.msra.mxu1 %v113_v6  ;;  %v696_v14 = vld [vmem:[%s1165_s3 + $0x20] sm:$0xff]  ;;  %v146_v15 = vld [vmem:[%s1167_s5 + $0x18] sm:$0xff]  ;;  %v145_v16 = vld [vmem:[%s1167_s5 + $0x10] sm:$0xff] }
  0x14   :  { %251 = vmatpush.msrb.mxu0 %v699_v9  ;;  %166 = vmatpush.msra.mxu2 %v146_v15  ;;  %v762_v17 = vld [vmem:[#allocation5] ss:$0 sm:$0xff]  ;;  %v763_v21 = vld [vmem:[#allocation5 + $0x1] ss:$0 sm:$0xff]  ;;  %v144_v25 = vld [vmem:[%s1167_s5 + $0x8] sm:$0xff] }
  0x15   :  { %137 = vmatpush.msra.mxu1 %v112_v7  ;;  %v143_v26 = vld [vmem:[%s1167_s5] sm:$0xff]  ;;  %v704_v27 = vld [vmem:[%s1167_s5 + $0x38] sm:$0xff]  ;;  %v703_v28 = vld [vmem:[%s1167_s5 + $0x30] sm:$0xff] }
  0x16   :  { %252 = vmatpush.msrb.mxu0 %v698_v11  ;;  %167 = vmatpush.msra.mxu2 %v145_v16  ;;  %v715_v29 = vld [vmem:[%s1165_s3 + $0x58] sm:$0xff]  ;;  %v702_v30 = vld [vmem:[%s1167_s5 + $0x28] sm:$0xff]  ;;  %v714_v31 = vld [vmem:[%s1165_s3 + $0x50] sm:$0xff] }
  0x17   :  { %138 = vmatpush.msra.mxu1 %v111_v8  ;;  %284 = vmatpush.msrb.mxu3 %v704_v27  ;;  %v701_v32 = vld [vmem:[%s1167_s5 + $0x20] sm:$0xff]  ;;  %v713_v33 = vld [vmem:[%s1165_s3 + $0x48] sm:$0xff]  ;;  %v725_v35 = vld [vmem:[%s1163_s1 + $0x38] sm:$0xf] }
  0x18   :  { %253 = vmatpush.msrb.mxu0 %v697_v12  ;;  %168 = vmatpush.msra.mxu2 %v144_v25  ;;  %v712_v34 = vld [vmem:[%s1165_s3 + $0x40] sm:$0xff]  ;;  %v724_v36 = vld [vmem:[%s1163_s1 + $0x30] sm:$0xff]  ;;  %v764_v37 = vld [vmem:[#allocation7] ss:$0 sm:$0xff]  ;;  %v73_v25 = vlaneseq }
  0x19   :  { %710 = vmatpush.msk.msrb.mxu1 %vm86_vm0, %v709_v10  ;;  %285 = vmatpush.msrb.mxu3 %v703_v28  ;;  %v765_v40 = vld [vmem:[#allocation7 + $0x1] ss:$0 sm:$0xff]  ;;  %v766_v41 = vld [vmem:[#allocation5 + $0x2] ss:$0 sm:$0xff]  ;;  %v720_v47 = vld [vmem:[%s1167_s5 + $0x58] sm:$0xff] }
  0x1a   :  { %254 = vmatpush.msrb.mxu0 %v696_v14  ;;  %169 = vmatpush.msra.mxu2 %v143_v26  ;;  %v719_v48 = vld [vmem:[%s1167_s5 + $0x50] sm:$0xff]  ;;  %v718_v49 = vld [vmem:[%s1167_s5 + $0x48] sm:$0xff]  ;;  %v717_v50 = vld [vmem:[%s1167_s5 + $0x40] sm:$0xff] }
  0x1b   :  { %338 = vmatpush.msrb.mxu1 %v708_v13  ;;  %286 = vmatpush.msrb.mxu3 %v702_v30  ;;  %v731_v51 = vld [vmem:[%s1165_s3 + $0x78] sm:$0xff]  ;;  %v730_v52 = vld [vmem:[%s1165_s3 + $0x70] sm:$0xff]  ;;  %v729_v53 = vld [vmem:[%s1165_s3 + $0x68] sm:$0xff] }
  0x1c   :  { %369 = vmatpush.msrb.mxu2 %v715_v29  ;;  %402 = vmatpush.msra.mxu0 %v720_v47  ;;  %v741_v54 = vld [vmem:[%s1163_s1 + $0x48] sm:$0xf]  ;;  %v728_v55 = vld [vmem:[%s1165_s3 + $0x60] sm:$0xff] }
  0x1d   :  { %287 = vmatpush.msrb.mxu3 %v701_v32  ;;  %v740_v56 = vld [vmem:[%s1163_s1 + $0x40] sm:$0xff]  ;;  %v769_v1 = vld [vmem:[#allocation7 + $0x2] ss:$0 sm:$0xff] }
  0x1e   :  { %370 = vmatpush.msrb.mxu2 %v714_v31  ;;  %403 = vmatpush.msra.mxu0 %v719_v48  ;;  %v767_v57 = vld [vmem:[%s1168_s6] ss:$0 sm:$0xff]  ;;  %v768_v61 = vld [vmem:[%s1168_s6 + $0x1] ss:$0 sm:$0xff]  ;;  %v770_v7 = vld [vmem:[#allocation5 + $0x3] ss:$0 sm:$0xff] }
  0x1f   :  { %726 = vmatpush.msk.msra.mxu3 %vm86_vm0, %v725_v35  ;;  %v1098_v31 = vand.u32 127, %v73_v25  ;;  %v745_v47 = vld [vmem:[%s1165_s3 + $0x88] sm:$0xff]  ;;  %v744_v48 = vld [vmem:[%s1165_s3 + $0x80] sm:$0xff] }
  0x20   :  { %371 = vmatpush.msrb.mxu2 %v713_v33  ;;  %404 = vmatpush.msra.mxu0 %v718_v49  ;;  %v771_v49 = vld [vmem:[%s1168_s6 + $0x2] ss:$0 sm:$0xff] }
  0x21   :  { %456 = vmatpush.msra.mxu3 %v724_v36  ;;  %vm75_vm7 = vcmp.lt.s32.totalorder %v1098_v31, 8 }
  0x22   :  { %372 = vmatpush.msrb.mxu2 %v712_v34  ;;  %405 = vmatpush.msra.mxu0 %v717_v50  ;;  %v752_v50 = vld [vmem:[%s1167_s5 + $0x98] sm:$0xff] }
  0x8f   :  { %v107_v18 = vpop.f32.mrf.mxu0 }
  0x90   :  { %v108_v19 = vadd.f32 %v762_v17, %v107_v18 }
  0x92   :  { %v110_v20 = vmax.f32 %v108_v19, 0.0 }
  0x94   :  { %689 = vmatmul.msk.f32.vlgmr.msra.gmra.mxu1 %vm119_vm2, %v110_v20 }
  0x95   :  { %487 = vmatpush.msra.mxu1 %v731_v51 }
  0x96   :  { %v222_v22 = vpop.f32.mrf.mxu3 }
  0x97   :  { %v223_v23 = vadd.f32 %v763_v21, %v222_v22  ;;  %488 = vmatpush.msra.mxu1 %v730_v52 }
  0x99   :  { %v225_v24 = vmax.f32 %v223_v23, 0.0  ;;  %489 = vmatpush.msra.mxu1 %v729_v53 }
  0x9b   :  { %700 = vmatmul.msk.f32.vlgmr.msrb.gmra.mxu0 %vm119_vm2, %v225_v24  ;;  %490 = vmatpush.msra.mxu1 %v728_v55 }
  0x9c   :  { %711 = vmatmul.msk.f32.vlgmr.msrb.gmra.mxu1 %vm82_vm1, %v968_v4  ;;  %742 = vmatpush.msk.msrb.mxu0 %vm86_vm0, %v741_v54  ;;  %v772_v54 = vld [vmem:[#allocation7 + $0x3] ss:$0 sm:$0xff] }
  0x9d   :  { %638 = vmatpush.msrb.mxu1 %v752_v50 }
  0x9e   :  { %574 = vmatpush.msrb.mxu0 %v740_v56  ;;  %v773_v56 = vld [vmem:[#allocation5 + $0x4] ss:$0 sm:$0xff] }
 0x111   :  { %v140_v38 = vpop.f32.mrf.mxu1 }
 0x112   :  { %v141_v39 = vadd.f32 %v764_v37, %v140_v38 }
 0x114   :  { %690 = vmatmul.msk.f32.vlgmr.msra.gmra.mxu2 %vm119_vm2, %v141_v39 }
 0x118   :  { %v256_v42 = vpop.f32.mrf.mxu0 }
 0x119   :  { %v257_v43 = vadd.f32 %v765_v40, %v256_v42  ;;  %v340_v44 = vpop.f32.mrf.mxu1  ;;  %v735_v42 = vld [vmem:[%s1167_s5 + $0x70] sm:$0xff] }
 0x11a   :  { %v341_v45 = vadd.f32 %v766_v41, %v340_v44  ;;  %v736_v41 = vld [vmem:[%s1167_s5 + $0x78] sm:$0xff]  ;;  %v734_v44 = vld [vmem:[%s1167_s5 + $0x68] sm:$0xff] }
 0x11b   :  { %706 = vmatmul.msk.f32.vlgmr.msrb.gmra.mxu3 %vm119_vm2, %v257_v43  ;;  %520 = vmatpush.msra.mxu2 %v736_v41  ;;  %v747_v43 = vld [vmem:[%s1165_s3 + $0x98] sm:$0xff] }
 0x11c   :  { %v343_v46 = vmax.f32 %v341_v45, 0.0  ;;  %605 = vmatpush.msrb.mxu3 %v747_v43  ;;  %v746_v45 = vld [vmem:[%s1165_s3 + $0x90] sm:$0xff] }
 0x11d   :  { %521 = vmatpush.msra.mxu2 %v735_v42 }
 0x11e   :  { %716 = vmatmul.msk.f32.vlgmr.msrb.gmra.mxu2 %vm119_vm2, %v343_v46  ;;  %v733_v46 = vld [vmem:[%s1167_s5 + $0x60] sm:$0xff]  ;;  %606 = vmatpush.msrb.mxu3 %v746_v45 }
 0x11f   :  { %522 = vmatpush.msra.mxu2 %v734_v44 }
 0x120   :  { %607 = vmatpush.msrb.mxu3 %v745_v47 }
 0x121   :  { %523 = vmatpush.msra.mxu2 %v733_v46 }
 0x122   :  { %608 = vmatpush.msrb.mxu3 %v744_v48 }
 0x123   :  { %727 = vmatmul.msk.f32.vlgmr.msra.gmra.mxu3 %vm82_vm1, %v968_v4 }
 0x197   :  { %v171_v58 = vpop.f32.mrf.mxu2 }
 0x198   :  { %v172_v59 = vadd.f32 %v767_v57, %v171_v58 }
 0x19a   :  { %v177_v60 = vmin.f32 %v172_v59, 20.0  ;;  %vm176_vm4 = vcmp.gt.f32.partialorder %v172_v59, 20.0  ;;  %v691_v36 = vclamps-f32 %v172_v59, 1000.0 }
 0x19c   :  { %v178_v62 = vmul.f32 1.442695, %v177_v60 }
 0x19e   :  { %v289_v63 = vpop.f32.mrf.mxu3  ;;  %777 = vpow2.f32 %v178_v62 }
 0x19f   :  { %v290_v0 = vadd.f32 %v768_v61, %v289_v63 }
 0x1a1   :  { %v295_v2 = vmin.f32 %v290_v0, 20.0  ;;  %v374_v3 = vpop.f32.mrf.mxu2  ;;  %vm294_vm6 = vcmp.gt.f32.partialorder %v290_v0, 20.0  ;;  %v707_v34 = vclamps-f32 %v290_v0, 1000.0 }
 0x1a2   :  { %v375_v6 = vadd.f32 %v769_v1, %v374_v3 }
 0x1a3   :  { %v296_v5 = vmul.f32 1.442695, %v295_v2 }
 0x1a4   :  { %v778_v8 = vpop.eup %777  ;;  %722 = vmatmul.msk.f32.vlgmr.msra.gmra.mxu0 %vm119_vm2, %v375_v6 }
 0x1a5   :  { %779 = vpow2.f32 %v296_v5  ;;  %v180_v9 = vadd.f32 1.0, %v778_v8  ;;  %v183_v11 = vmul.f32 -0.5, %v778_v8  ;;  %v186_v16 = vand.u32 2147483647, %v778_v8 }
 0x1a6   :  { %v458_v10 = vpop.f32.mrf.mxu3 }
 0x1a7   :  { %v459_v12 = vadd.f32 %v770_v7, %v458_v10  ;;  %781 = vlog2.f32 %v180_v9  ;;  %v184_v15 = vadd.f32 1.0, %v183_v11  ;;  %vm187_vm3 = vcmp.lt.f32.partialorder %v186_v16, 0.0004427343  ;;  %v749_v16 = vld [vmem:[%s1167_s5 + $0x80] sm:$0xff] }
 0x1a9   :  { %v461_v13 = vmax.f32 %v459_v12, 0.0  ;;  %v185_v21 = vmul.f32 %v778_v8, %v184_v15  ;;  %v750_v15 = vld [vmem:[%s1167_s5 + $0x88] sm:$0xff] }
 0x1ab   :  { %v780_v14 = vpop.eup %779  ;;  %732 = vmatmul.msk.f32.vlgmr.msra.gmra.mxu1 %vm119_vm2, %v461_v13 }
 0x1ac   :  { %v298_v17 = vadd.f32 1.0, %v780_v14  ;;  %v301_v18 = vmul.f32 -0.5, %v780_v14  ;;  %743 = vmatmul.msk.f32.vlgmr.msrb.gmra.mxu0 %vm82_vm1, %v968_v4  ;;  %v304_v23 = vand.u32 2147483647, %v780_v14 }
 0x1ad   :  { %v782_v19 = vpop.eup %781 }
 0x1ae   :  { %783 = vlog2.f32 %v298_v17  ;;  %v182_v20 = vmul.f32 0.6931472, %v782_v19  ;;  %v302_v22 = vadd.f32 1.0, %v301_v18  ;;  %vm305_vm5 = vcmp.lt.f32.partialorder %v304_v23, 0.0004427343 }
 0x1af   :  { %v775_v17 = vld [vmem:[#allocation7 + $0x4] ss:$0 sm:$0xff] }
 0x1b0   :  { %v188_v24 = vsel %vm187_vm3, %v185_v21, %v182_v20  ;;  %v303_v27 = vmul.f32 %v780_v14, %v302_v22  ;;  %v751_v14 = vld [vmem:[%s1167_s5 + $0x90] sm:$0xff]  ;;  %v774_v20 = vld [vmem:[%s1168_s6 + $0x3] ss:$0 sm:$0xff]  ;;  %s904_s5 = smov [#allocation8]  }
 0x1b1   :  { %v189_v26 = vsel %vm176_vm4, %v172_v59, %v188_v24  ;;  %639 = vmatpush.msrb.mxu1 %v751_v14 }
 0x1b2   :  { %v190_v29 = vmax.f32 %v189_v26, 1e-06 }
 0x1b3   :  { %640 = vmatpush.msrb.mxu1 %v750_v15 }
 0x1b4   :  { %v784_v28 = vpop.eup %783  ;;  %v191_v33 = vmin.f32 %v190_v29, 1.0 }
 0x1b5   :  { %v300_v30 = vmul.f32 0.6931472, %v784_v28  ;;  %641 = vmatpush.msrb.mxu1 %v749_v16 }
 0x1b6   :  { %v192_v38 = vsel %vm75_vm7, %v691_v36, %v191_v33 }
 0x1b7   :  { %v306_v4 = vsel %vm305_vm5, %v303_v27, %v300_v30  ;;  %v776_v27 = vld [vmem:[%s1168_s6 + $0x4] ss:$0 sm:$0xff]  ;;  %s674_s6 = sshll.u32 %s904_s5, 4  ;;  %s675_s6 = int_to_ptr.vmem [resolvable:$true] %s674_s6 }
 0x1b8   :  { %v307_v32 = vsel %vm294_vm6, %v290_v0, %v306_v4 }
 0x1b9   :  { %v308_v35 = vmax.f32 %v307_v32, 1e-06 }
 0x1bb   :  { %v309_v37 = vmin.f32 %v308_v35, 1.0 }
 0x1bd   :  { %v310_v39 = vsel %vm75_vm7, %v707_v34, %v309_v37 }
 0x1be   :  { %v311_v40 = vadd.f32 %v310_v39, %v192_v38 }
 0x221   :  { %v407_v51 = vpop.f32.mrf.mxu0 }
 0x222   :  { %v408_v52 = vadd.f32 %v771_v49, %v407_v51 }
 0x224   :  { %v413_v53 = vmin.f32 %v408_v52, 20.0  ;;  %vm412_vm9 = vcmp.gt.f32.partialorder %v408_v52, 20.0  ;;  %v723_v10 = vclamps-f32 %v408_v52, 1000.0 }
 0x226   :  { %v414_v55 = vmul.f32 1.442695, %v413_v53 }
 0x228   :  { %v492_v57 = vpop.f32.mrf.mxu1  ;;  %785 = vpow2.f32 %v414_v55 }
 0x229   :  { %v493_v58 = vadd.f32 %v772_v54, %v492_v57  ;;  %v576_v59 = vpop.f32.mrf.mxu0 }
 0x22a   :  { %v577_v60 = vadd.f32 %v773_v56, %v576_v59 }
 0x22b   :  { %738 = vmatmul.msk.f32.vlgmr.msra.gmra.mxu2 %vm119_vm2, %v493_v58 }
 0x22c   :  { %v579_v61 = vmax.f32 %v577_v60, 0.0 }
 0x22e   :  { %v786_v62 = vpop.eup %785  ;;  %748 = vmatmul.msk.f32.vlgmr.msrb.gmra.mxu3 %vm119_vm2, %v579_v61 }
 0x22f   :  { %v416_v63 = vadd.f32 1.0, %v786_v62  ;;  %v419_v0 = vmul.f32 -0.5, %v786_v62  ;;  %v422_v2 = vand.u32 2147483647, %v786_v62 }
 0x231   :  { %787 = vlog2.f32 %v416_v63  ;;  %v420_v1 = vadd.f32 1.0, %v419_v0  ;;  %vm423_vm8 = vcmp.lt.f32.partialorder %v422_v2, 0.0004427343 }
 0x233   :  { %v421_v6 = vmul.f32 %v786_v62, %v420_v1 }
 0x237   :  { %v788_v3 = vpop.eup %787 }
 0x238   :  { %v418_v5 = vmul.f32 0.6931472, %v788_v3 }
 0x23a   :  { %v424_v7 = vsel %vm423_vm8, %v421_v6, %v418_v5 }
 0x23b   :  { %v425_v8 = vsel %vm412_vm9, %v408_v52, %v424_v7 }
 0x23c   :  { %v426_v9 = vmax.f32 %v425_v8, 1e-06 }
 0x23e   :  { %v427_v11 = vmin.f32 %v426_v9, 1.0 }
 0x240   :  { %v428_v12 = vsel %vm75_vm7, %v723_v10, %v427_v11 }
 0x241   :  { %v429_v13 = vadd.f32 %v428_v12, %v311_v40 }
 0x2ae   :  { %v525_v21 = vpop.f32.mrf.mxu2 }
 0x2af   :  { %v526_v22 = vadd.f32 %v774_v20, %v525_v21 }
 0x2b1   :  { %v610_v18 = vpop.f32.mrf.mxu3  ;;  %v531_v23 = vmin.f32 %v526_v22, 20.0  ;;  %vm530_vm11 = vcmp.gt.f32.partialorder %v526_v22, 20.0  ;;  %v739_v47 = vclamps-f32 %v526_v22, 1000.0 }
 0x2b2   :  { %v611_v19 = vadd.f32 %v775_v17, %v610_v18 }
 0x2b3   :  { %v532_v24 = vmul.f32 1.442695, %v531_v23 }
 0x2b4   :  { %754 = vmatmul.msk.f32.vlgmr.msrb.gmra.mxu1 %vm119_vm2, %v611_v19 }
 0x2b5   :  { %789 = vpow2.f32 %v532_v24 }
 0x2bb   :  { %v790_v25 = vpop.eup %789 }
 0x2bc   :  { %v534_v26 = vadd.f32 1.0, %v790_v25  ;;  %v537_v29 = vmul.f32 -0.5, %v790_v25  ;;  %v540_v35 = vand.u32 2147483647, %v790_v25 }
 0x2be   :  { %791 = vlog2.f32 %v534_v26  ;;  %v538_v32 = vadd.f32 1.0, %v537_v29  ;;  %vm541_vm10 = vcmp.lt.f32.partialorder %v540_v35, 0.0004427343 }
 0x2c0   :  { %v539_v37 = vmul.f32 %v790_v25, %v538_v32 }
 0x2c4   :  { %v792_v34 = vpop.eup %791 }
 0x2c5   :  { %v536_v36 = vmul.f32 0.6931472, %v792_v34 }
 0x2c7   :  { %v542_v39 = vsel %vm541_vm10, %v539_v37, %v536_v36 }
 0x2c8   :  { %v543_v42 = vsel %vm530_vm11, %v526_v22, %v542_v39 }
 0x2c9   :  { %v544_v43 = vmax.f32 %v543_v42, 1e-06 }
 0x2cb   :  { %v545_v48 = vmin.f32 %v544_v43, 1.0 }
 0x2cd   :  { %v546_v54 = vsel %vm75_vm7, %v739_v47, %v545_v48 }
 0x2ce   :  { %v547_v57 = vadd.f32 %v546_v54, %v429_v13 }
 0x331   :  { %v643_v28 = vpop.f32.mrf.mxu1 }
 0x332   :  { %v644_v30 = vadd.f32 %v776_v27, %v643_v28 }
 0x334   :  { %v649_v4 = vmin.f32 %v644_v30, 20.0  ;;  %vm648_vm13 = vcmp.gt.f32.partialorder %v644_v30, 20.0  ;;  %v755_v55 = vclamps-f32 %v644_v30, 1000.0 }
 0x336   :  { %v650_v33 = vmul.f32 1.442695, %v649_v4 }
 0x338   :  { %793 = vpow2.f32 %v650_v33 }
 0x33e   :  { %v794_v38 = vpop.eup %793 }
 0x33f   :  { %v652_v40 = vadd.f32 1.0, %v794_v38  ;;  %v655_v41 = vmul.f32 -0.5, %v794_v38  ;;  %v658_v45 = vand.u32 2147483647, %v794_v38 }
 0x341   :  { %795 = vlog2.f32 %v652_v40  ;;  %v656_v44 = vadd.f32 1.0, %v655_v41  ;;  %vm659_vm12 = vcmp.lt.f32.partialorder %v658_v45, 0.0004427343 }
 0x343   :  { %v657_v50 = vmul.f32 %v794_v38, %v656_v44 }
 0x347   :  { %v796_v46 = vpop.eup %795 }
 0x348   :  { %v654_v49 = vmul.f32 0.6931472, %v796_v46 }
 0x34a   :  { %v660_v51 = vsel %vm659_vm12, %v657_v50, %v654_v49 }
 0x34b   :  { %v661_v52 = vsel %vm648_vm13, %v644_v30, %v660_v51 }
 0x34c   :  { %v662_v53 = vmax.f32 %v661_v52, 1e-06 }
 0x34e   :  { %v663_v56 = vmin.f32 %v662_v53, 1.0 }
 0x350   :  { %v664_v58 = vsel %vm75_vm7, %v755_v55, %v663_v56 }
 0x351   :  { %v665_v59 = vadd.f32 %v664_v58, %v547_v57 }
 0x353   :  { %v666_v60 = vmul.f32 0.2, %v665_v59 }
 0x355   :  { %668 = vst.msk [vmem:[#allocation8] sm:$0x3] %vm667_vm14, %v666_v60 }
 0x356   :  { %679 = dma.vmem_to_hbm [thread:$0]  %s675_s6, 32, %s677_s20, [#allocation4]  }
 0x357   :  { %897 = dma.done.wait [#allocation4], 32  }
 0x358   :  { %898 = vsyncadd [#allocation4], 4294967264 }
 0x359   :  { %684 = vsyncpa [#allocation3], 1 }
 0x35a   :  { %685 = vsyncpa [#allocation6], 1 }
 0x35b   :  { %686 = vsyncpa [#allocation4], 1 }

</bundles_post_ra>
